<compile_context>
chip_gen: v5e
topology: v5e:2x2
jax: 0.10.0
libtpu: 0.0.40
codegen_flags: <defaults>
</compile_context>

<pallas_src>
import functools

import numpy as np
import jax
import jax.numpy as jnp
from jax.experimental import pallas as pl
from jax.experimental.pallas import tpu as pltpu


# ----------------------- parameter init (matches torch) -------------------- #
def init_upsample_network(upsample_scales, freq_axis_kernel_size=1, cin_pad=0):
    """Deterministic parameter init matching the PyTorch module's __init__."""
    if freq_axis_kernel_size != 1:
        # TODO(synk): freq_axis_kernel_size > 1 (2D conv over the freq axis).
        raise NotImplementedError("freq_axis_kernel_size != 1 is not supported")
    params = []
    for scale in upsample_scales:
        k = (freq_axis_kernel_size, int(scale) * 2 + 1)
        # nn.utils.weight_norm at init: g = ||v||  =>  effective weight == v.
        w = np.full((1, 1) + k, 1.0 / float(np.prod(k)), dtype=np.float32)
        params.append(w)
    total_scale = int(np.prod(upsample_scales))
    indent = int(cin_pad) * total_scale
    return params, indent


# -------------------- exact composed-stencil coefficients ------------------ #
def _layers_apply_np(x, scales, taps_list):
    """Float64 numpy reference of the layer stack on one 1-D signal."""
    g = np.asarray(x, dtype=np.float64)
    for taps, s in zip(taps_list, scales):
        g = np.repeat(g, s)                       # Stretch2d(scale, 1, 'nearest')
        n = g.shape[0]
        gp = np.pad(g, (s, s))                    # conv zero padding
        out = np.zeros(n, dtype=np.float64)
        for j in range(2 * s + 1):
            out += float(taps[j]) * gp[j:j + n]
        g = out
    return g


def _build_coeffs(scales, taps_list, t0):
    """Exact (n_taps, T0, P) stencil of the composed (linear) network.

    out[r, t*P + q] = sum_n coeffs[n, t, q] * x_pad[r, t + offsets[n]]
    with x_pad zero-padded by `halo` on both sides.  Boundary rows carry the
    exact end-truncated coefficients, reproducing the per-layer zero padding.
    """
    scales = [int(s) for s in scales]
    n_layers = len(scales)
    p_total = int(np.prod(scales))
    halo = 2 * n_layers                      # safe bound on the composed reach
    n_taps_full = 2 * halo + 1
    t_probe = min(t0, n_taps_full)

    # Exact probe operator: responses of the layer stack to unit impulses.
    probe = np.zeros((t_probe * p_total, t_probe), dtype=np.float64)
    for k in range(t_probe):
        e = np.zeros(t_probe, dtype=np.float64)
        e[k] = 1.0
        probe[:, k] = _layers_apply_np(e, scales, taps_list)

    coeffs = np.zeros((n_taps_full, t0, p_total), dtype=np.float64)
    for t in range(t0):
        if t_probe == t0:
            tp = t                           # probe IS the full problem
        elif t <= halo:
            tp = t                           # left-boundary region
        elif t >= t0 - halo - 1:
            tp = t - t0 + t_probe            # right-boundary region
        else:
            tp = halo                        # truncation-free interior row
        for j in range(n_taps_full):
            tsrc = t + j - halo              # real input index
            k = tp + j - halo                # probe input index
            if 0 <= tsrc < t0 and 0 <= k < t_probe:
                coeffs[j, t, :] = probe[tp * p_total:(tp + 1) * p_total, k]

    keep = [j for j in range(n_taps_full) if np.any(coeffs[j] != 0.0)]
    return coeffs[keep].astype(np.float32), tuple(int(j) for j in keep), halo


# ----------------------------- Pallas kernel ------------------------------- #
def _upsample_stencil_kernel(x_ref, c_ref, o_ref, *, t_blk, tap_offsets):
    """One (row-block, time-block) tile of the fused upsample network.

    x_ref: (block_r, T0 + 2*halo, 1)  zero-padded input, time on sublanes
    c_ref: (n_taps, t_blk, P)         stencil coefficients for this time block
    o_ref: (block_r, t_blk, P)        interleaved output tile (phases on lanes)
    """
    tj = pl.program_id(1)
    base = tj * t_blk
    if t_blk % 8 == 0:
        base = pl.multiple_of(base, 8)

    acc = None
    for n, off in enumerate(tap_offsets):
        xs = x_ref[:, pl.ds(base + off, t_blk), :]      # (block_r, t_blk, 1)
        term = xs * c_ref[n]                            # -> (block_r, t_blk, P)
        acc = term if acc is None else acc + term
    o_ref[...] = acc.astype(o_ref.dtype)


# ------------------------- block / VMEM bookkeeping ------------------------ #
def _padded_tile_bytes(shape, itemsize=4):
    """VMEM footprint of one buffered block (minor -> 128 lanes, 2nd -> 8)."""
    lanes = -(-shape[-1] // 128) * 128
    subl = -(-shape[-2] // 8) * 8
    lead = 1
    for d in shape[:-2]:
        lead *= d
    return lead * subl * lanes * itemsize


def _vmem_limit_bytes():
    phys = 64 * 1024 * 1024              # conservative default (v7x per-core)
    try:
        phys = int(pltpu.get_tpu_info().vmem_capacity_bytes)
    except Exception:                     # off-device / older API: keep default
        pass
    return max(32 * 1024 * 1024, min(int(phys * 3 // 4), 100 * 1024 * 1024))


def _choose_blocks(n_rows, t0, p_total, n_taps, halo, vmem_limit):
    """Largest (block_r, t_blk) whose explicit VMEM accounting fits the budget.

    Accounting: 2x input block + 2x coeff block (double-buffered pipeline)
    + 2x output block + ~2x output block of traced intermediates.
    """
    budget = vmem_limit - 4 * 1024 * 1024

    def divisors(n):
        cands = {n}
        for d in range(8, n + 1, 8):
            if n % d == 0:
                cands.add(d)
        return sorted(cands, reverse=True)

    def fits(br, tb):
        xb = _padded_tile_bytes((br, t0 + 2 * halo, 1))
        cb = _padded_tile_bytes((n_taps, tb, p_total))
        ob = _padded_tile_bytes((br, tb, p_total))
        return 2 * xb + 2 * cb + 4 * ob <= budget

    t_cands = divisors(t0)
    r_cands = divisors(n_rows)
    for tb in t_cands:                    # prefer large time blocks ...
        for br in r_cands:                # ... then the largest fitting rows
            if fits(br, tb):
                return br, tb
    return r_cands[-1], t_cands[-1]       # best effort: smallest blocks


# --------------------------------- forward --------------------------------- #
def upsample_network_forward(c, params, upsample_scales, indent,
                             activation="none"):
    """c: (B, C, T) float32 -> (B, C, T * prod(upsample_scales)) minus indent."""
    if activation != "none":
        # TODO(synk): per-layer nonlinearities break the linear composition
        # used here; they would need the layer-by-layer kernel variant.
        raise NotImplementedError("only upsample_activation='none' is supported")

    bsz, cch, t0 = c.shape
    n_rows = bsz * cch
    scales = tuple(int(s) for s in upsample_scales)
    p_total = int(np.prod(scales))

    taps_list = [np.asarray(w, dtype=np.float64)[0, 0, 0, :] for w in params]
    coeffs_np, tap_offsets, halo = _build_coeffs(scales, taps_list, t0)
    n_taps = coeffs_np.shape[0]

    x = c.reshape(n_rows, t0).astype(jnp.float32)
    x_pad = jnp.pad(x, ((0, 0), (halo, halo)))[..., None]   # (R, T0+2H, 1)
    coeffs = jnp.asarray(coeffs_np)                          # (n_taps, T0, P)

    vmem_limit = _vmem_limit_bytes()
    block_r, t_blk = _choose_blocks(n_rows, t0, p_total, n_taps, halo,
                                    vmem_limit)
    # Prefer >=2 parallel blocks when everything fits in one: keeps both v7x
    # TensorCores busy; costs only one extra ~0.35us grid step on 1-TC chips.
    if (block_r == n_rows and t_blk == t0 and n_rows >= 16
            and (n_rows // 2) % 8 == 0):
        block_r = n_rows // 2

    grid = (n_rows // block_r, t0 // t_blk)
    kernel = functools.partial(_upsample_stencil_kernel,
                               t_blk=t_blk, tap_offsets=tap_offsets)

    y = pl.pallas_call(
        kernel,
        out_shape=jax.ShapeDtypeStruct((n_rows, t0, p_total), c.dtype),
        grid=grid,
        in_specs=[
            pl.BlockSpec((block_r, t0 + 2 * halo, 1), lambda i, j: (i, 0, 0)),
            pl.BlockSpec((n_taps, t_blk, p_total), lambda i, j: (0, j, 0)),
        ],
        out_specs=pl.BlockSpec((block_r, t_blk, p_total),
                               lambda i, j: (i, j, 0)),
        compiler_params=pltpu.CompilerParams(
            dimension_semantics=("parallel", "parallel"),
            vmem_limit_bytes=vmem_limit),
    )(x_pad, coeffs)

    # (R, T0, P) is already the interleaved result; merging the last two dims
    # is a free contiguous reshape -- no post-kernel transpose, no extra HBM
    # pass over the P-times-larger tensor.
    out = y.reshape(bsz, cch, t0 * p_total)
    if indent > 0:
        out = out[:, :, indent:-indent]
    return out


# ------------------------------ pure-JAX reference ------------------------- #
def upsample_network_ref(c, params, upsample_scales, indent, activation="none"):
    x = c[:, None, :, :]                       # (B, 1, C, T), NCHW like PyTorch
    for w, scale in zip(params, upsample_scales):
        x = jnp.repeat(x, scale, axis=-1)      # Stretch2d(scale, 1, 'nearest')
        taps = jnp.asarray(w)[0, 0, 0, :]
        kw = taps.shape[0]
        s = (kw - 1) // 2
        t_out = x.shape[-1]
        xp = jnp.pad(x, ((0, 0), (0, 0), (0, 0), (s, s)))
        x = sum(taps[j] * xp[..., j:j + t_out] for j in range(kw))
        if activation == "relu":
            x = jnp.maximum(x, 0.0)
        elif activation == "tanh":
            x = jnp.tanh(x)
    x = x[:, 0]
    if indent > 0:
        x = x[:, :, indent:-indent]
    return x


# ----------------------------------- main ----------------------------------- #
if __name__ == "__main__":
    # Config 1: module-consistent small shapes (full-probe / single time block).
    B, C, T = 2, 16, 8
    upsample_scales = [2, 2, 2]            # total upsampling = 8
    cin_pad = 0                            # module default
    params, indent = init_upsample_network(upsample_scales, 1, cin_pad)

    key = jax.random.PRNGKey(0)
    c = jax.random.normal(key, (B, C, T), dtype=jnp.float32)

    out = jax.block_until_ready(
        upsample_network_forward(c, params, upsample_scales, indent))
    ref = jax.block_until_ready(
        upsample_network_ref(c, params, upsample_scales, indent))

    expected_shape = (B, C, T * int(np.prod(upsample_scales)) - 2 * indent)
    assert out.shape == expected_shape, (out.shape, expected_shape)
    assert out.dtype == jnp.float32
    np.testing.assert_allclose(np.asarray(out), np.asarray(ref),
                               rtol=1e-5, atol=1e-5)

    # Config 2: exercises the boundary-probe path (T0 > 2*halo + 1) and a
    # different scale set, still at small shapes.
    scales2 = [4, 4]
    params2, indent2 = init_upsample_network(scales2, 1, 0)
    c2 = jax.random.normal(jax.random.PRNGKey(1), (2, 8, 24), dtype=jnp.float32)
    out2 = jax.block_until_ready(
        upsample_network_forward(c2, params2, scales2, indent2))
    ref2 = jax.block_until_ready(
        upsample_network_ref(c2, params2, scales2, indent2))
    assert out2.shape == (2, 8, 24 * 16)
    np.testing.assert_allclose(np.asarray(out2), np.asarray(ref2),
                               rtol=1e-5, atol=1e-5)

    print("KERNEL_OK")
</pallas_src>

<mosaic_0001>
module attributes {stable_mosaic.version = 11 : i64} {
  func.func @_upsample_stencil_kernel(%arg0: i32, %arg1: i32, %arg2: memref<16x20x1xf32, #tpu.memory_space<vmem>>, %arg3: memref<5x8x8xf32, #tpu.memory_space<vmem>>, %arg4: memref<16x8x8xf32, #tpu.memory_space<vmem>>) attributes {dimension_semantics = [#tpu.dimension_semantics<parallel>, #tpu.dimension_semantics<parallel>], iteration_bounds = array<i64: 2, 1>, scalar_prefetch = 0 : i64, scratch_operands = 0 : i64, tpu.core_type = #tpu.core_type<tc>, window_params = [{transform_indices = @transform_0, window_bounds = array<i64: 16, 20, 1>}, {transform_indices = @transform_1, window_bounds = array<i64: 5, 8, 8>}, {transform_indices = @transform_2, window_bounds = array<i64: 16, 8, 8>}]} {
    %c8_i32 = arith.constant 8 : i32
    %0 = arith.muli %arg1, %c8_i32 : i32
    %1 = tpu.assume_multiple %0, 8 : i32
    %c4_i32 = arith.constant 4 : i32
    %2 = arith.addi %1, %c4_i32 : i32
    %c0 = arith.constant 0 : index
    %3 = arith.index_cast %2 : i32 to index
    %c0_0 = arith.constant 0 : index
    %4 = vector.load %arg2[%c0, %3, %c0_0] : memref<16x20x1xf32, #tpu.memory_space<vmem>>, vector<16x8x1xf32>
    %c0_1 = arith.constant 0 : index
    %c0_2 = arith.constant 0 : index
    %c0_3 = arith.constant 0 : index
    %5 = vector.load %arg3[%c0_1, %c0_2, %c0_3] : memref<5x8x8xf32, #tpu.memory_space<vmem>>, vector<1x8x8xf32>
    %6 = vector.shape_cast %5 : vector<1x8x8xf32> to vector<8x8xf32>
    %7 = vector.shape_cast %6 : vector<8x8xf32> to vector<1x8x8xf32>
    %8 = vector.broadcast %4 : vector<16x8x1xf32> to vector<16x8x8xf32>
    %9 = vector.broadcast %7 : vector<1x8x8xf32> to vector<16x8x8xf32>
    %10 = arith.mulf %8, %9 : vector<16x8x8xf32>
    %c5_i32 = arith.constant 5 : i32
    %11 = arith.addi %1, %c5_i32 : i32
    %c0_4 = arith.constant 0 : index
    %12 = arith.index_cast %11 : i32 to index
    %c0_5 = arith.constant 0 : index
    %13 = vector.load %arg2[%c0_4, %12, %c0_5] : memref<16x20x1xf32, #tpu.memory_space<vmem>>, vector<16x8x1xf32>
    %c1 = arith.constant 1 : index
    %c0_6 = arith.constant 0 : index
    %c0_7 = arith.constant 0 : index
    %14 = vector.load %arg3[%c1, %c0_6, %c0_7] : memref<5x8x8xf32, #tpu.memory_space<vmem>>, vector<1x8x8xf32>
    %15 = vector.shape_cast %14 : vector<1x8x8xf32> to vector<8x8xf32>
    %16 = vector.shape_cast %15 : vector<8x8xf32> to vector<1x8x8xf32>
    %17 = vector.broadcast %13 : vector<16x8x1xf32> to vector<16x8x8xf32>
    %18 = vector.broadcast %16 : vector<1x8x8xf32> to vector<16x8x8xf32>
    %19 = arith.mulf %17, %18 : vector<16x8x8xf32>
    %20 = arith.addf %10, %19 : vector<16x8x8xf32>
    %c6_i32 = arith.constant 6 : i32
    %21 = arith.addi %1, %c6_i32 : i32
    %c0_8 = arith.constant 0 : index
    %22 = arith.index_cast %21 : i32 to index
    %c0_9 = arith.constant 0 : index
    %23 = vector.load %arg2[%c0_8, %22, %c0_9] : memref<16x20x1xf32, #tpu.memory_space<vmem>>, vector<16x8x1xf32>
    %c2 = arith.constant 2 : index
    %c0_10 = arith.constant 0 : index
    %c0_11 = arith.constant 0 : index
    %24 = vector.load %arg3[%c2, %c0_10, %c0_11] : memref<5x8x8xf32, #tpu.memory_space<vmem>>, vector<1x8x8xf32>
    %25 = vector.shape_cast %24 : vector<1x8x8xf32> to vector<8x8xf32>
    %26 = vector.shape_cast %25 : vector<8x8xf32> to vector<1x8x8xf32>
    %27 = vector.broadcast %23 : vector<16x8x1xf32> to vector<16x8x8xf32>
    %28 = vector.broadcast %26 : vector<1x8x8xf32> to vector<16x8x8xf32>
    %29 = arith.mulf %27, %28 : vector<16x8x8xf32>
    %30 = arith.addf %20, %29 : vector<16x8x8xf32>
    %c7_i32 = arith.constant 7 : i32
    %31 = arith.addi %1, %c7_i32 : i32
    %c0_12 = arith.constant 0 : index
    %32 = arith.index_cast %31 : i32 to index
    %c0_13 = arith.constant 0 : index
    %33 = vector.load %arg2[%c0_12, %32, %c0_13] : memref<16x20x1xf32, #tpu.memory_space<vmem>>, vector<16x8x1xf32>
    %c3 = arith.constant 3 : index
    %c0_14 = arith.constant 0 : index
    %c0_15 = arith.constant 0 : index
    %34 = vector.load %arg3[%c3, %c0_14, %c0_15] : memref<5x8x8xf32, #tpu.memory_space<vmem>>, vector<1x8x8xf32>
    %35 = vector.shape_cast %34 : vector<1x8x8xf32> to vector<8x8xf32>
    %36 = vector.shape_cast %35 : vector<8x8xf32> to vector<1x8x8xf32>
    %37 = vector.broadcast %33 : vector<16x8x1xf32> to vector<16x8x8xf32>
    %38 = vector.broadcast %36 : vector<1x8x8xf32> to vector<16x8x8xf32>
    %39 = arith.mulf %37, %38 : vector<16x8x8xf32>
    %40 = arith.addf %30, %39 : vector<16x8x8xf32>
    %c8_i32_16 = arith.constant 8 : i32
    %41 = arith.addi %1, %c8_i32_16 : i32
    %c0_17 = arith.constant 0 : index
    %42 = arith.index_cast %41 : i32 to index
    %c0_18 = arith.constant 0 : index
    %43 = vector.load %arg2[%c0_17, %42, %c0_18] : memref<16x20x1xf32, #tpu.memory_space<vmem>>, vector<16x8x1xf32>
    %c4 = arith.constant 4 : index
    %c0_19 = arith.constant 0 : index
    %c0_20 = arith.constant 0 : index
    %44 = vector.load %arg3[%c4, %c0_19, %c0_20] : memref<5x8x8xf32, #tpu.memory_space<vmem>>, vector<1x8x8xf32>
    %45 = vector.shape_cast %44 : vector<1x8x8xf32> to vector<8x8xf32>
    %46 = vector.shape_cast %45 : vector<8x8xf32> to vector<1x8x8xf32>
    %47 = vector.broadcast %43 : vector<16x8x1xf32> to vector<16x8x8xf32>
    %48 = vector.broadcast %46 : vector<1x8x8xf32> to vector<16x8x8xf32>
    %49 = arith.mulf %47, %48 : vector<16x8x8xf32>
    %50 = arith.addf %40, %49 : vector<16x8x8xf32>
    %c0_21 = arith.constant 0 : index
    %c0_22 = arith.constant 0 : index
    %c0_23 = arith.constant 0 : index
    %51 = vector.load %arg4[%c0_21, %c0_22, %c0_23] : memref<16x8x8xf32, #tpu.memory_space<vmem>>, vector<16x8x8xf32>
    tpu.vector_store %arg4[%c0_21, %c0_22, %c0_23], %50 {strides = array<i32>} : memref<16x8x8xf32, #tpu.memory_space<vmem>>, vector<16x8x8xf32>,
    return
  }
  func.func @transform_0(%arg0: i32, %arg1: i32) -> (i32, i32, i32) {
    %c0_i32 = arith.constant 0 : i32
    %c0_i32_0 = arith.constant 0 : i32
    %c0_i32_1 = arith.constant 0 : i32
    return %arg0, %c0_i32, %c0_i32_0 : i32, i32, i32
  }
  func.func @transform_1(%arg0: i32, %arg1: i32) -> (i32, i32, i32) {
    %c0_i32 = arith.constant 0 : i32
    %c0_i32_0 = arith.constant 0 : i32
    %c0_i32_1 = arith.constant 0 : i32
    return %c0_i32, %arg1, %c0_i32_0 : i32, i32, i32
  }
  func.func @transform_2(%arg0: i32, %arg1: i32) -> (i32, i32, i32) {
    %c0_i32 = arith.constant 0 : i32
    %c0_i32_0 = arith.constant 0 : i32
    return %arg0, %arg1, %c0_i32 : i32, i32, i32
  }
}

</mosaic_0001>

<bundles_post_ra>
// kernel: tpu_custom_call.1
= control target key start
LH: loop header
LB: loop body
LE: loop exit
PB: predicated region body
PF: predicated region fallthrough
CT: control target
= control target key end

     0   :  { %s1118_s9 = smov 0   ;;  %s1120_s10 = smov 0   ;;  %s1463_s0 = inlined_call_operand.vmem [shape: f32[32,20,1], index: 0, kind: input, shape index: {}]   ;;  %s1464_s1 = inlined_call_operand.vmem [shape: f32[5,8,8], index: 1, kind: input, shape index: {}]   ;;  %s1465_s2 = inlined_call_operand.vmem [shape: f32[32,8,8], index: 2, kind: output, shape index: {}]  }
   0x1   :  { %s1122_s11 = smov 0  }
   0x2 LB: > { %s24_s12 = sadd.s32 1, %s1096_s10  ;;  %p958_p0 = scmp.ge.s32.totalorder %s1100_s11, 1  ;;  %s1100_s11 = sphi %s1122_s11, %s12_s11   ;;  %s1096_s10 = sphi %s1120_s10, %s1467_s10   ;;  %s1092_s9 = sphi %s1118_s9, %s1466_s9  }
   0x3   : > { %p26_p1 = scmp.ge.s32.totalorder %s24_s12, 2  ;;  %p137_p2 = scmp.lt.s32.totalorder %s1100_s11, 3 }
   0x5   : > { %s1469_s12 = smov (%p26_p1, %s24_s12), 0  ;;  %p138_p3 = pnand %p958_p0, %p137_p2 }
   0x6   : > { %s959_s13 = sshll.u32 (!%p138_p3), %s1092_s9, 4 }
   0x7   : > { %141 = sbr.rel (%p138_p3) target bundleno = 346 (0x15a), region = 28  ;;  %p168_p4 = scmp.lt.s32.totalorder (!%p138_p3), %s959_s13, 31 }
   0xc   : > { %v1102_v0 = vmov 0   ;;  %s1471_s13 = smov (!%p168_p4, %s959_s13), 31  ;;  %v1210_v61 = vld [vmem:[%s1464_s1 + $0x8] sm:$0xff]  ;;  %v1215_v62 = vld [vmem:[%s1464_s1] sm:$0xff]  ;;  %vm831_vm0 = vcmask 64512  }
   0xd   : > { %1077 = vset.pattern.permute.xlu2 %v1102_v0  ;;  %1076 = vset.pattern.permute.xlu1 %v1102_v0  ;;  %s1049_s14 = smul.u32 24, %s1471_s13  ;;  %s962_s28 = sshll.u32 %s1471_s13, 3 }
   0xe   : > { %1075 = vset.pattern.permute.xlu0 %v1102_v0  ;;  %s1376_s3 = scalar_lea.vmem %s1465_s2, %s962_s28 }
   0xf   : > { %s1142_s17 = scalar_lea.vmem %s1463_s0, %s1049_s14 }
  0x10   : > { %v967_v1 = vld [vmem:[%s1142_s17 + $0x64] sm:$0xff]  ;;  %v965_v2 = vld [vmem:[%s1142_s17 + $0x34] sm:$0xff]  ;;  %v968_v4 = vld [vmem:[%s1142_s17 + $0x7c] sm:$0xff] }
  0x11   : > { %v963_v3 = vld [vmem:[%s1142_s17 + $0x4] sm:$0xff]  ;;  %229 = vperm.xlu2 %1077, %v967_v1   ;;  %219 = vperm.xlu1 %1076, %v965_v2   ;;  %v966_v5 = vld [vmem:[%s1142_s17 + $0x4c] sm:$0xff]  ;;  %v964_v6 = vld [vmem:[%s1142_s17 + $0x1c] sm:$0xff] }
  0x12   : > { %209 = vperm.xlu0 %1075, %v963_v3   ;;  %v971_v7 = vld [vmem:[%s1142_s17 + $0xc4] sm:$0xff]  ;;  %v970_v8 = vld [vmem:[%s1142_s17 + $0xac] sm:$0xff]  ;;  %v969_v9 = vld [vmem:[%s1142_s17 + $0x94] sm:$0xff] }
  0x13   : > { %v974_v10 = vld [vmem:[%s1142_s17 + $0x10c] sm:$0xff]  ;;  %v973_v11 = vld [vmem:[%s1142_s17 + $0xf4] sm:$0xff]  ;;  %v972_v12 = vld [vmem:[%s1142_s17 + $0xdc] sm:$0xff] }
  0x14   : > { %v977_v13 = vld [vmem:[%s1142_s17 + $0x154] sm:$0xff]  ;;  %v976_v14 = vld [vmem:[%s1142_s17 + $0x13c] sm:$0xff]  ;;  %v975_v15 = vld [vmem:[%s1142_s17 + $0x124] sm:$0xff] }
  0x15   : > { %v980_v16 = vld [vmem:[%s1142_s17 + $0x1d] sm:$0xff]  ;;  %v979_v17 = vld [vmem:[%s1142_s17 + $0x5] sm:$0xff]  ;;  %v982_v20 = vld [vmem:[%s1142_s17 + $0x4d] sm:$0xff] }
  0x16   : > { %v978_v18 = vld [vmem:[%s1142_s17 + $0x16c] sm:$0xff]  ;;  %v981_v21 = vld [vmem:[%s1142_s17 + $0x35] sm:$0xff]  ;;  %v984_v24 = vld [vmem:[%s1142_s17 + $0x7d] sm:$0xff] }
  0x17   : > { %v983_v19 = vld [vmem:[%s1142_s17 + $0x65] sm:$0xff]  ;;  %v986_v22 = vld [vmem:[%s1142_s17 + $0xad] sm:$0xff]  ;;  %v985_v23 = vld [vmem:[%s1142_s17 + $0x95] sm:$0xff] }
  0x18   : > { %v989_v25 = vld [vmem:[%s1142_s17 + $0xf5] sm:$0xff]  ;;  %v988_v26 = vld [vmem:[%s1142_s17 + $0xdd] sm:$0xff]  ;;  %v987_v27 = vld [vmem:[%s1142_s17 + $0xc5] sm:$0xff] }
  0x19   : > { %234 = vperm.xlu2 %1077, %v968_v4   ;;  %224 = vperm.xlu1 %1076, %v966_v5   ;;  %v992_v28 = vld [vmem:[%s1142_s17 + $0x13d] sm:$0xff]  ;;  %v991_v29 = vld [vmem:[%s1142_s17 + $0x125] sm:$0xff]  ;;  %v990_v30 = vld [vmem:[%s1142_s17 + $0x10d] sm:$0xff] }
  0x1a   : > { %214 = vperm.xlu0 %1075, %v964_v6   ;;  %v996_v31 = vld [vmem:[%s1142_s17 + $0x6] sm:$0xff]  ;;  %v993_v33 = vld [vmem:[%s1142_s17 + $0x155] sm:$0xff]  ;;  %v997_v36 = vld [vmem:[%s1142_s17 + $0x1e] sm:$0xff] }
  0x1b   : > { %v994_v32 = vld [vmem:[%s1142_s17 + $0x16d] sm:$0xff]  ;;  %v998_v35 = vld [vmem:[%s1142_s17 + $0x36] sm:$0xff]  ;;  %v1001_v39 = vld [vmem:[%s1142_s17 + $0x7e] sm:$0xff] }
  0x1c   : > { %v999_v34 = vld [vmem:[%s1142_s17 + $0x4e] sm:$0xff]  ;;  %v1002_v38 = vld [vmem:[%s1142_s17 + $0x96] sm:$0xff]  ;;  %v1000_v40 = vld [vmem:[%s1142_s17 + $0x66] sm:$0xff] }
  0x1d   : > { %v1005_v42 = vld [vmem:[%s1142_s17 + $0xde] sm:$0xff]  ;;  %v1004_v43 = vld [vmem:[%s1142_s17 + $0xc6] sm:$0xff]  ;;  %v1003_v44 = vld [vmem:[%s1142_s17 + $0xae] sm:$0xff] }
  0x1e   : > { %v1008_v46 = vld [vmem:[%s1142_s17 + $0x126] sm:$0xff]  ;;  %v1007_v47 = vld [vmem:[%s1142_s17 + $0x10e] sm:$0xff]  ;;  %v1006_v48 = vld [vmem:[%s1142_s17 + $0xf6] sm:$0xff] }
  0x1f   : > { %v1011_v52 = vld [vmem:[%s1142_s17 + $0x16e] sm:$0xff]  ;;  %v1010_v53 = vld [vmem:[%s1142_s17 + $0x156] sm:$0xff]  ;;  %v1009_v54 = vld [vmem:[%s1142_s17 + $0x13e] sm:$0xff] }
  0x20   : > { %v1015_v58 = vld [vmem:[%s1142_s17 + $0x37] sm:$0xff]  ;;  %v1014_v59 = vld [vmem:[%s1142_s17 + $0x1f] sm:$0xff]  ;;  %v1013_v60 = vld [vmem:[%s1142_s17 + $0x7] sm:$0xff] }
  0x21   : > { %249 = vperm.xlu2 %1077, %v971_v7   ;;  %244 = vperm.xlu1 %1076, %v970_v8   ;;  %v1018_v5 = vld [vmem:[%s1142_s17 + $0x7f] sm:$0xff]  ;;  %v1017_v6 = vld [vmem:[%s1142_s17 + $0x67] sm:$0xff]  ;;  %v1016_v7 = vld [vmem:[%s1142_s17 + $0x4f] sm:$0xff] }
  0x22   : > { %239 = vperm.xlu0 %1075, %v969_v9  }
  0x29   : > { %264 = vperm.xlu2 %1077, %v974_v10   ;;  %259 = vperm.xlu1 %1076, %v973_v11  }
  0x2a   : > { %254 = vperm.xlu0 %1075, %v972_v12  }
  0x31   : > { %279 = vperm.xlu2 %1077, %v977_v13   ;;  %274 = vperm.xlu1 %1076, %v976_v14   ;;  %v1021_v14 = vld [vmem:[%s1142_s17 + $0xc7] sm:$0xff] }
  0x32   : > { %269 = vperm.xlu0 %1075, %v975_v15   ;;  %v1020_v15 = vld [vmem:[%s1142_s17 + $0xaf] sm:$0xff] }
  0x39   : > { %330 = vperm.xlu2 %1077, %v980_v16   ;;  %325 = vperm.xlu1 %1076, %v979_v17   ;;  %v1019_v16 = vld [vmem:[%s1142_s17 + $0x97] sm:$0xff] }
  0x3a   : > { %284 = vperm.xlu0 %1075, %v978_v18  }
  0x41   : > { %345 = vperm.xlu2 %1077, %v983_v19   ;;  %340 = vperm.xlu1 %1076, %v982_v20  }
  0x42   : > { %335 = vperm.xlu0 %1075, %v981_v21  }
  0x49   : > { %360 = vperm.xlu2 %1077, %v986_v22   ;;  %355 = vperm.xlu1 %1076, %v985_v23   ;;  %v1024_v23 = vld [vmem:[%s1142_s17 + $0x10f] sm:$0xff] }
  0x4a   : > { %350 = vperm.xlu0 %1075, %v984_v24   ;;  %v1023_v24 = vld [vmem:[%s1142_s17 + $0xf7] sm:$0xff] }
  0x51   : > { %375 = vperm.xlu2 %1077, %v989_v25   ;;  %370 = vperm.xlu1 %1076, %v988_v26   ;;  %v1022_v25 = vld [vmem:[%s1142_s17 + $0xdf] sm:$0xff] }
  0x52   : > { %365 = vperm.xlu0 %1075, %v987_v27  }
  0x59   : > { %390 = vperm.xlu2 %1077, %v992_v28   ;;  %385 = vperm.xlu1 %1076, %v991_v29  }
  0x5a   : > { %380 = vperm.xlu0 %1075, %v990_v30  }
  0x61   : > { %457 = vperm.xlu2 %1077, %v996_v31   ;;  %400 = vperm.xlu1 %1076, %v994_v32  }
  0x62   : > { %395 = vperm.xlu0 %1075, %v993_v33  }
  0x69   : > { %472 = vperm.xlu2 %1077, %v999_v34   ;;  %467 = vperm.xlu1 %1076, %v998_v35   ;;  %v1027_v35 = vld [vmem:[%s1142_s17 + $0x157] sm:$0xff] }
  0x6a   : > { %462 = vperm.xlu0 %1075, %v997_v36   ;;  %v1026_v36 = vld [vmem:[%s1142_s17 + $0x13f] sm:$0xff] }
  0x6b   : > { %v230_v37 = vpop.permute.xlu2 %229 }
  0x6c   : > { %v291_v10 = vmul.f32 %v230_v37, %v1215_v62  ;;  %v1025_v37 = vld [vmem:[%s1142_s17 + $0x127] sm:$0xff] }
  0x71   : > { %487 = vperm.xlu2 %1077, %v1002_v38   ;;  %482 = vperm.xlu1 %1076, %v1001_v39  }
  0x72   : > { %477 = vperm.xlu0 %1075, %v1000_v40  }
  0x73   : > { %v1183_v41 = vpop.permute.xlu2 %234 }
  0x79   : > { %502 = vperm.xlu2 %1077, %v1005_v42   ;;  %497 = vperm.xlu1 %1076, %v1004_v43  }
  0x7a   : > { %492 = vperm.xlu0 %1075, %v1003_v44  }
  0x7b   : > { %v1188_v45 = vpop.permute.xlu2 %249 }
  0x81   : > { %517 = vperm.xlu2 %1077, %v1008_v46   ;;  %512 = vperm.xlu1 %1076, %v1007_v47  }
  0x82   : > { %507 = vperm.xlu0 %1075, %v1006_v48  }
  0x83   : > { %v1193_v49 = vpop.permute.xlu2 %264  ;;  %v1195_v50 = vpop.permute.xlu1 %219 }
  0x84   : > { %v210_v51 = vpop.permute.xlu0 %209  ;;  %v289_v47 = vmul.f32 %v1195_v50, %v1215_v62 }
  0x85   : > { %v287_v28 = vmul.f32 %v210_v51, %v1215_v62 }
  0x89   : > { %532 = vperm.xlu2 %1077, %v1011_v52   ;;  %527 = vperm.xlu1 %1076, %v1010_v53   ;;  %v1031_v53 = vld [vmem:[%s1142_s17 + $0x20] sm:$0xff] }
  0x8a   : > { %522 = vperm.xlu0 %1075, %v1009_v54   ;;  %v1030_v54 = vld [vmem:[%s1142_s17 + $0x8] sm:$0xff] }
  0x8b   : > { %v1200_v55 = vpop.permute.xlu2 %279  ;;  %v1202_v56 = vpop.permute.xlu1 %224 }
  0x8c   : > { %v215_v57 = vpop.permute.xlu0 %214  ;;  %v290_v40 = vmul.f32 %v1202_v56, %v1215_v62  ;;  %v1028_v56 = vld [vmem:[%s1142_s17 + $0x16f] sm:$0xff] }
  0x8d   : > { %v288_v1 = vmul.f32 %v215_v57, %v1215_v62 }
  0x91   : > { %599 = vperm.xlu2 %1077, %v1015_v58   ;;  %594 = vperm.xlu1 %1076, %v1014_v59   ;;  %v1273_v58 = vld [vmem:[%s1464_s1 + $0x10] sm:$0xff] }
  0x92   : > { %589 = vperm.xlu0 %1075, %v1013_v60  }
  0x93   : > { %v331_v63 = vpop.permute.xlu2 %330  ;;  %v245_v0 = vpop.permute.xlu1 %244 }
  0x94   : > { %v404_v2 = vmul.f32 %v1210_v61, %v331_v63  ;;  %v1219_v3 = vpop.permute.xlu0 %239  ;;  %v294_v19 = vmul.f32 %v245_v0, %v1215_v62 }
  0x95   : > { %v293_v60 = vmul.f32 %v1219_v3, %v1215_v62  ;;  %v1032_v3 = vld [vmem:[%s1142_s17 + $0x38] sm:$0xff] }
  0x96   : > { %v1221_v4 = vadd.f32 %v404_v2, %v288_v1  ;;  %v292_v2 = vmul.f32 %v1183_v41, %v1215_v62 }
  0x99   : > { %614 = vperm.xlu2 %1077, %v1018_v5   ;;  %609 = vperm.xlu1 %1076, %v1017_v6  }
  0x9a   : > { %604 = vperm.xlu0 %1075, %v1016_v7  }
  0x9b   : > { %v346_v8 = vpop.permute.xlu2 %345  ;;  %v260_v9 = vpop.permute.xlu1 %259 }
  0x9c   : > { %v407_v11 = vmul.f32 %v1210_v61, %v346_v8  ;;  %v1228_v12 = vpop.permute.xlu0 %254  ;;  %v297_v29 = vmul.f32 %v260_v9, %v1215_v62  ;;  %v1034_v8 = vld [vmem:[%s1142_s17 + $0x68] sm:$0xff]  ;;  %v1033_v9 = vld [vmem:[%s1142_s17 + $0x50] sm:$0xff] }
  0x9d   : > { %v296_v41 = vmul.f32 %v1228_v12, %v1215_v62  ;;  %v1035_v12 = vld [vmem:[%s1142_s17 + $0x80] sm:$0xff] }
  0x9e   : > { %v1230_v13 = vadd.f32 %v407_v11, %v291_v10 }
  0xa1   : > { %629 = vperm.xlu2 %1077, %v1021_v14   ;;  %624 = vperm.xlu1 %1076, %v1020_v15  }
  0xa2   : > { %619 = vperm.xlu0 %1075, %v1019_v16  }
  0xa3   : > { %v361_v17 = vpop.permute.xlu2 %360  ;;  %v275_v18 = vpop.permute.xlu1 %274 }
  0xa4   : > { %v410_v20 = vmul.f32 %v1210_v61, %v361_v17  ;;  %v1237_v21 = vpop.permute.xlu0 %269  ;;  %v300_v42 = vmul.f32 %v275_v18, %v1215_v62  ;;  %v295_v18 = vmul.f32 %v1188_v45, %v1215_v62 }
  0xa5   : > { %v299_v45 = vmul.f32 %v1237_v21, %v1215_v62 }
  0xa6   : > { %v1239_v22 = vadd.f32 %v410_v20, %v294_v19 }
  0xa9   : > { %644 = vperm.xlu2 %1077, %v1024_v23   ;;  %639 = vperm.xlu1 %1076, %v1023_v24   ;;  %v1037_v24 = vld [vmem:[%s1142_s17 + $0xb0] sm:$0xff] }
  0xaa   : > { %634 = vperm.xlu0 %1075, %v1022_v25   ;;  %v1036_v25 = vld [vmem:[%s1142_s17 + $0x98] sm:$0xff] }
  0xab   : > { %v376_v26 = vpop.permute.xlu2 %375  ;;  %v326_v27 = vpop.permute.xlu1 %325 }
  0xac   : > { %v413_v30 = vmul.f32 %v1210_v61, %v376_v26  ;;  %v403_v31 = vmul.f32 %v1210_v61, %v326_v27  ;;  %v1248_v32 = vpop.permute.xlu0 %284 }
  0xae   : > { %v1250_v33 = vadd.f32 %v413_v30, %v297_v29  ;;  %v419_v34 = vadd.f32 %v403_v31, %v287_v28 }
  0xb1   : > { %659 = vperm.xlu2 %1077, %v1027_v35   ;;  %654 = vperm.xlu1 %1076, %v1026_v36  }
  0xb2   : > { %649 = vperm.xlu0 %1075, %v1025_v37  }
  0xb3   : > { %v391_v38 = vpop.permute.xlu2 %390  ;;  %v341_v39 = vpop.permute.xlu1 %340 }
  0xb4   : > { %v416_v43 = vmul.f32 %v1210_v61, %v391_v38  ;;  %v406_v44 = vmul.f32 %v1210_v61, %v341_v39  ;;  %v336_v46 = vpop.permute.xlu0 %335  ;;  %v1040_v38 = vld [vmem:[%s1142_s17 + $0xf8] sm:$0xff]  ;;  %v1039_v39 = vld [vmem:[%s1142_s17 + $0xe0] sm:$0xff] }
  0xb5   : > { %v405_v48 = vmul.f32 %v1210_v61, %v336_v46 }
  0xb6   : > { %v1263_v51 = vadd.f32 %v416_v43, %v300_v42  ;;  %v422_v52 = vadd.f32 %v406_v44, %v290_v40  ;;  %v1038_v42 = vld [vmem:[%s1142_s17 + $0xc8] sm:$0xff] }
  0xb7   : > { %v1267_v57 = vadd.f32 %v405_v48, %v289_v47  ;;  %v301_v48 = vmul.f32 %v1200_v55, %v1215_v62 }
  0xb9   : > { %726 = vperm.xlu2 %1077, %v1031_v53   ;;  %721 = vperm.xlu1 %1076, %v1030_v54  }
  0xba   : > { %664 = vperm.xlu0 %1075, %v1028_v56   ;;  %v1043_v56 = vld [vmem:[%s1142_s17 + $0x140] sm:$0xff] }
  0xbb   : > { %v458_v50 = vpop.permute.xlu2 %457  ;;  %v356_v59 = vpop.permute.xlu1 %355 }
  0xbc   : > { %v535_v63 = vmul.f32 %v1273_v58, %v458_v50  ;;  %v409_v0 = vmul.f32 %v1210_v61, %v356_v59  ;;  %v351_v1 = vpop.permute.xlu0 %350  ;;  %v1042_v50 = vld [vmem:[%s1142_s17 + $0x128] sm:$0xff] }
  0xbd   : > { %v408_v5 = vmul.f32 %v1210_v61, %v351_v1 }
  0xbe   : > { %v1282_v6 = vadd.f32 %v535_v63, %v419_v34  ;;  %v425_v7 = vadd.f32 %v409_v0, %v293_v60  ;;  %v298_v34 = vmul.f32 %v1193_v49, %v1215_v62  ;;  %v302_v49 = vmul.f32 %v1248_v32, %v1215_v62  ;;  %v1041_v60 = vld [vmem:[%s1142_s17 + $0x110] sm:$0xff] }
  0xbf   : > { %v1286_v10 = vadd.f32 %v408_v5, %v292_v2  ;;  %v1045_v2 = vld [vmem:[%s1142_s17 + $0x170] sm:$0xff]  ;;  %v1044_v5 = vld [vmem:[%s1142_s17 + $0x158] sm:$0xff] }
  0xc1   : > { %741 = vperm.xlu2 %1077, %v1034_v8   ;;  %736 = vperm.xlu1 %1076, %v1033_v9  }
  0xc2   : > { %731 = vperm.xlu0 %1075, %v1032_v3  }
  0xc3   : > { %v473_v11 = vpop.permute.xlu2 %472  ;;  %v371_v14 = vpop.permute.xlu1 %370 }
  0xc4   : > { %v538_v15 = vmul.f32 %v1273_v58, %v473_v11  ;;  %v412_v16 = vmul.f32 %v1210_v61, %v371_v14  ;;  %v366_v17 = vpop.permute.xlu0 %365 }
  0xc5   : > { %v411_v19 = vmul.f32 %v1210_v61, %v366_v17 }
  0xc6   : > { %v1296_v20 = vadd.f32 %v538_v15, %v422_v52  ;;  %v428_v23 = vadd.f32 %v412_v16, %v296_v41  ;;  %v1342_v15 = vld [vmem:[%s1464_s1 + $0x18] sm:$0xff] }
  0xc7   : > { %v1300_v26 = vadd.f32 %v411_v19, %v295_v18 }
  0xc9   : > { %756 = vperm.xlu2 %1077, %v1037_v24   ;;  %751 = vperm.xlu1 %1076, %v1036_v25  }
  0xca   : > { %746 = vperm.xlu0 %1075, %v1035_v12  }
  0xcb   : > { %v488_v27 = vpop.permute.xlu2 %487  ;;  %v386_v28 = vpop.permute.xlu1 %385 }
  0xcc   : > { %v541_v29 = vmul.f32 %v1273_v58, %v488_v27  ;;  %v415_v30 = vmul.f32 %v1210_v61, %v386_v28  ;;  %v381_v31 = vpop.permute.xlu0 %380 }
  0xcd   : > { %v414_v35 = vmul.f32 %v1210_v61, %v381_v31 }
  0xce   : > { %v1310_v36 = vadd.f32 %v541_v29, %v425_v7  ;;  %v431_v37 = vadd.f32 %v415_v30, %v299_v45 }
  0xcf   : > { %v430_v40 = vadd.f32 %v414_v35, %v298_v34 }
  0xd1   : > { %771 = vperm.xlu2 %1077, %v1040_v38   ;;  %766 = vperm.xlu1 %1076, %v1039_v39  }
  0xd2   : > { %761 = vperm.xlu0 %1075, %v1038_v42  }
  0xd3   : > { %v503_v21 = vpop.permute.xlu2 %502  ;;  %v401_v43 = vpop.permute.xlu1 %400 }
  0xd4   : > { %v544_v44 = vmul.f32 %v1273_v58, %v503_v21  ;;  %v418_v46 = vmul.f32 %v1210_v61, %v401_v43  ;;  %v396_v47 = vpop.permute.xlu0 %395 }
  0xd5   : > { %v417_v52 = vmul.f32 %v1210_v61, %v396_v47 }
  0xd6   : > { %v1322_v53 = vadd.f32 %v544_v44, %v428_v23  ;;  %v434_v54 = vadd.f32 %v418_v46, %v302_v49 }
  0xd7   : > { %v433_v59 = vadd.f32 %v417_v52, %v301_v48 }
  0xd9   : > { %786 = vperm.xlu2 %1077, %v1043_v56   ;;  %781 = vperm.xlu1 %1076, %v1042_v50   ;;  %v1368_v56 = vld [vmem:[%s1464_s1 + $0x20] sm:$0xff] }
  0xda   : > { %776 = vperm.xlu0 %1075, %v1041_v60  }
  0xdb   : > { %v518_v32 = vpop.permute.xlu2 %517  ;;  %v468_v63 = vpop.permute.xlu1 %467 }
  0xdc   : > { %v547_v0 = vmul.f32 %v1273_v58, %v518_v32  ;;  %v537_v55 = vmul.f32 %v1273_v58, %v468_v63  ;;  %v463_v62 = vpop.permute.xlu0 %462 }
  0xdd   : > { %v536_v48 = vmul.f32 %v1273_v58, %v463_v62 }
  0xde   : > { %v1329_v61 = vadd.f32 %v547_v0, %v431_v37  ;;  %v553_v1 = vadd.f32 %v537_v55, %v1267_v57 }
  0xdf   : > { %v552_v50 = vadd.f32 %v536_v48, %v1221_v4 }
  0xe1   : > { %796 = vperm.xlu1 %1076, %v1045_v2  }
  0xe2   : > { %791 = vperm.xlu0 %1075, %v1044_v5  }
  0xe3   : > { %v533_v7 = vpop.permute.xlu2 %532  ;;  %v483_v8 = vpop.permute.xlu1 %482 }
  0xe4   : > { %v550_v9 = vmul.f32 %v1273_v58, %v533_v7  ;;  %v540_v3 = vmul.f32 %v1273_v58, %v483_v8  ;;  %v478_v11 = vpop.permute.xlu0 %477 }
  0xe5   : > { %v539_v55 = vmul.f32 %v1273_v58, %v478_v11 }
  0xe6   : > { %v1336_v14 = vadd.f32 %v550_v9, %v434_v54  ;;  %v556_v41 = vadd.f32 %v540_v3, %v1286_v10 }
  0xeb   : > { %v600_v57 = vpop.permute.xlu2 %599  ;;  %v498_v16 = vpop.permute.xlu1 %497 }
  0xec   : > { %v669_v17 = vmul.f32 %v1342_v15, %v600_v57  ;;  %v543_v18 = vmul.f32 %v1273_v58, %v498_v16  ;;  %v493_v19 = vpop.permute.xlu0 %492 }
  0xed   : > { %v542_v3 = vmul.f32 %v1273_v58, %v493_v19 }
  0xee   : > { %v1346_v23 = vadd.f32 %v669_v17, %v553_v1  ;;  %v559_v24 = vadd.f32 %v543_v18, %v1300_v26  ;;  %v555_v1 = vadd.f32 %v539_v55, %v1230_v13 }
  0xef   : > { %v558_v11 = vadd.f32 %v542_v3, %v1239_v22 }
  0xf3   : > { %v615_v25 = vpop.permute.xlu2 %614  ;;  %v513_v12 = vpop.permute.xlu1 %512 }
  0xf4   : > { %v672_v10 = vmul.f32 %v1342_v15, %v615_v25  ;;  %v546_v27 = vmul.f32 %v1273_v58, %v513_v12  ;;  %v508_v28 = vpop.permute.xlu0 %507 }
  0xf5   : > { %v545_v25 = vmul.f32 %v1273_v58, %v508_v28 }
  0xf6   : > { %v1351_v45 = vadd.f32 %v672_v10, %v556_v41  ;;  %v562_v29 = vadd.f32 %v546_v27, %v430_v40 }
  0xf7   : > { %v561_v27 = vadd.f32 %v545_v25, %v1250_v33 }
  0xfb   : > { %v630_v30 = vpop.permute.xlu2 %629  ;;  %v528_v31 = vpop.permute.xlu1 %527 }
  0xfc   : > { %v675_v34 = vmul.f32 %v1342_v15, %v630_v30  ;;  %v549_v35 = vmul.f32 %v1273_v58, %v528_v31  ;;  %v523_v37 = vpop.permute.xlu0 %522 }
  0xfe   : > { %v1355_v38 = vadd.f32 %v675_v34, %v559_v24  ;;  %v565_v26 = vadd.f32 %v549_v35, %v433_v59 }
 0x103   : > { %v645_v39 = vpop.permute.xlu2 %644  ;;  %v595_v42 = vpop.permute.xlu1 %594 }
 0x104   : > { %v678_v21 = vmul.f32 %v1342_v15, %v645_v39  ;;  %v590_v43 = vpop.permute.xlu0 %589  ;;  %v668_v54 = vmul.f32 %v1342_v15, %v595_v42 }
 0x105   : > { %v667_v10 = vmul.f32 %v1342_v15, %v590_v43 }
 0x106   : > { %v1358_v49 = vadd.f32 %v678_v21, %v562_v29  ;;  %v684_v32 = vadd.f32 %v668_v54, %v552_v50 }
 0x107   : > { %v683_v30 = vadd.f32 %v667_v10, %v1282_v6 }
 0x10b   : > { %v660_v44 = vpop.permute.xlu2 %659  ;;  %v610_v40 = vpop.permute.xlu1 %609 }
 0x10c   : > { %v681_v46 = vmul.f32 %v1342_v15, %v660_v44  ;;  %v605_v47 = vpop.permute.xlu0 %604  ;;  %v671_v4 = vmul.f32 %v1342_v15, %v610_v40 }
 0x10d   : > { %v670_v21 = vmul.f32 %v1342_v15, %v605_v47 }
 0x10e   : > { %v1362_v52 = vadd.f32 %v681_v46, %v565_v26  ;;  %v687_v7 = vadd.f32 %v671_v4, %v555_v1  ;;  %v548_v26 = vmul.f32 %v1273_v58, %v523_v37 }
 0x10f   : > { %v686_v40 = vadd.f32 %v670_v21, %v1296_v20 }
 0x110   : > { %v564_v33 = vadd.f32 %v548_v26, %v1263_v51 }
 0x113   : > { %v727_v59 = vpop.permute.xlu2 %726  ;;  %v625_v60 = vpop.permute.xlu1 %624 }
 0x114   : > { %v800_v63 = vmul.f32 %v1368_v56, %v727_v59  ;;  %v620_v0 = vpop.permute.xlu0 %619  ;;  %v674_v57 = vmul.f32 %v1342_v15, %v625_v60 }
 0x115   : > { %v673_v51 = vmul.f32 %v1342_v15, %v620_v0 }
 0x116   : > { %v816_v62 = vadd.f32 %v800_v63, %v684_v32  ;;  %v690_v18 = vadd.f32 %v674_v57, %v558_v11 }
 0x117   : > { %v689_v60 = vadd.f32 %v673_v51, %v1310_v36 }
 0x118   : > { %833 = vst.msk [vmem:[%s1376_s3 + $0x8] sm:$0xff] %vm831_vm0, %v816_v62 }
 0x11b   : > { %v742_v2 = vpop.permute.xlu2 %741  ;;  %v640_v5 = vpop.permute.xlu1 %639 }
 0x11c   : > { %v803_v8 = vmul.f32 %v1368_v56, %v742_v2  ;;  %v635_v9 = vpop.permute.xlu0 %634  ;;  %v677_v19 = vmul.f32 %v1342_v15, %v640_v5 }
 0x11d   : > { %v676_v0 = vmul.f32 %v1342_v15, %v635_v9 }
 0x11e   : > { %v819_v41 = vadd.f32 %v803_v8, %v687_v7  ;;  %v693_v31 = vadd.f32 %v677_v19, %v561_v27 }
 0x11f   : > { %v692_v1 = vadd.f32 %v676_v0, %v1322_v53 }
 0x120   : > { %836 = vst.msk [vmem:[%s1376_s3 + $0x20] sm:$0xff] %vm831_vm0, %v819_v41 }
 0x123   : > { %v757_v16 = vpop.permute.xlu2 %756  ;;  %v655_v17 = vpop.permute.xlu1 %654 }
 0x124   : > { %v806_v13 = vmul.f32 %v1368_v56, %v757_v16  ;;  %v650_v24 = vpop.permute.xlu0 %649  ;;  %v680_v43 = vmul.f32 %v1342_v15, %v655_v17 }
 0x126   : > { %v822_v12 = vadd.f32 %v806_v13, %v690_v18  ;;  %v696_v58 = vadd.f32 %v680_v43, %v564_v33 }
 0x128   : > { %839 = vst.msk [vmem:[%s1376_s3 + $0x38] sm:$0xff] %vm831_vm0, %v822_v12 }
 0x12b   : > { %v772_v22 = vpop.permute.xlu2 %771  ;;  %v722_v29 = vpop.permute.xlu1 %721 }
 0x12c   : > { %v809_v34 = vmul.f32 %v1368_v56, %v772_v22  ;;  %v799_v28 = vmul.f32 %v1368_v56, %v722_v29  ;;  %v665_v35 = vpop.permute.xlu0 %664 }
 0x12e   : > { %v825_v39 = vadd.f32 %v809_v34, %v693_v31  ;;  %v815_v42 = vadd.f32 %v799_v28, %v683_v30 }
 0x130   : > { %842 = vst.msk [vmem:[%s1376_s3 + $0x50] sm:$0xff] %vm831_vm0, %v825_v39 }
 0x131   : > { %832 = vst.msk [vmem:[%s1376_s3] sm:$0xff] %vm831_vm0, %v815_v42 }
 0x133   : > { %v787_v6 = vpop.permute.xlu2 %786  ;;  %v737_v44 = vpop.permute.xlu1 %736 }
 0x134   : > { %v812_v37 = vmul.f32 %v1368_v56, %v787_v6  ;;  %v802_v46 = vmul.f32 %v1368_v56, %v737_v44  ;;  %v732_v47 = vpop.permute.xlu0 %731 }
 0x135   : > { %v801_v48 = vmul.f32 %v1368_v56, %v732_v47 }
 0x136   : > { %v828_v54 = vadd.f32 %v812_v37, %v696_v58  ;;  %v818_v50 = vadd.f32 %v802_v46, %v686_v40 }
 0x137   : > { %v817_v59 = vadd.f32 %v801_v48, %v1346_v23 }
 0x138   : > { %845 = vst.msk [vmem:[%s1376_s3 + $0x68] sm:$0xff] %vm831_vm0, %v828_v54 }
 0x139   : > { %835 = vst.msk [vmem:[%s1376_s3 + $0x18] sm:$0xff] %vm831_vm0, %v818_v50 }
 0x13a   : > { %834 = vst.msk [vmem:[%s1376_s3 + $0x10] sm:$0xff] %vm831_vm0, %v817_v59 }
 0x13b   : > { %v752_v20 = vpop.permute.xlu1 %751 }
 0x13c   : > { %v805_v32 = vmul.f32 %v1368_v56, %v752_v20  ;;  %v747_v63 = vpop.permute.xlu0 %746 }
 0x13d   : > { %v804_v55 = vmul.f32 %v1368_v56, %v747_v63 }
 0x13e   : > { %v821_v62 = vadd.f32 %v805_v32, %v689_v60 }
 0x13f   : > { %v820_v23 = vadd.f32 %v804_v55, %v1351_v45  ;;  %v679_v45 = vmul.f32 %v1342_v15, %v650_v24 }
 0x140   : > { %838 = vst.msk [vmem:[%s1376_s3 + $0x30] sm:$0xff] %vm831_vm0, %v821_v62 }
 0x141   : > { %837 = vst.msk [vmem:[%s1376_s3 + $0x28] sm:$0xff] %vm831_vm0, %v820_v23  ;;  %v695_v3 = vadd.f32 %v679_v45, %v1329_v61 }
 0x143   : > { %v767_v4 = vpop.permute.xlu1 %766 }
 0x144   : > { %v808_v36 = vmul.f32 %v1368_v56, %v767_v4  ;;  %v762_v2 = vpop.permute.xlu0 %761 }
 0x145   : > { %v807_v5 = vmul.f32 %v1368_v56, %v762_v2 }
 0x146   : > { %v824_v7 = vadd.f32 %v808_v36, %v692_v1 }
 0x147   : > { %v823_v8 = vadd.f32 %v807_v5, %v1355_v38  ;;  %v682_v38 = vmul.f32 %v1342_v15, %v665_v35 }
 0x148   : > { %841 = vst.msk [vmem:[%s1376_s3 + $0x48] sm:$0xff] %vm831_vm0, %v824_v7 }
 0x149   : > { %840 = vst.msk [vmem:[%s1376_s3 + $0x40] sm:$0xff] %vm831_vm0, %v823_v8  ;;  %v698_v18 = vadd.f32 %v682_v38, %v1336_v14 }
 0x14b   : > { %v782_v9 = vpop.permute.xlu1 %781 }
 0x14c   : > { %v811_v53 = vmul.f32 %v1368_v56, %v782_v9  ;;  %v777_v41 = vpop.permute.xlu0 %776 }
 0x14d   : > { %v810_v57 = vmul.f32 %v1368_v56, %v777_v41 }
 0x14e   : > { %v827_v11 = vadd.f32 %v811_v53, %v695_v3 }
 0x14f   : > { %v826_v16 = vadd.f32 %v810_v57, %v1358_v49 }
 0x150   : > { %844 = vst.msk [vmem:[%s1376_s3 + $0x60] sm:$0xff] %vm831_vm0, %v827_v11 }
 0x151   : > { %843 = vst.msk [vmem:[%s1376_s3 + $0x58] sm:$0xff] %vm831_vm0, %v826_v16 }
 0x153   : > { %v797_v17 = vpop.permute.xlu1 %796 }
 0x154   : > { %v814_v61 = vmul.f32 %v1368_v56, %v797_v17  ;;  %v792_v13 = vpop.permute.xlu0 %791 }
 0x155   : > { %v813_v24 = vmul.f32 %v1368_v56, %v792_v13 }
 0x156   : > { %v830_v25 = vadd.f32 %v814_v61, %v698_v18 }
 0x157   : > { %v829_v12 = vadd.f32 %v813_v24, %v1362_v52 }
 0x158   : > { %847 = vst.msk [vmem:[%s1376_s3 + $0x78] sm:$0xff] %vm831_vm0, %v830_v25 }
 0x159   : > { %846 = vst.msk [vmem:[%s1376_s3 + $0x70] sm:$0xff] %vm831_vm0, %v829_v12 }
 0x15a PF: > { %s12_s11 = sadd.s32 1, %s1100_s11   ;;  %s1466_s9 = smov %s1096_s10 }
 0x15b   : > { %p9_p5 = scmp.ge.s32.totalorder %s12_s11, 4   ;;  %s1467_s10 = smov %s1469_s12 }
 0x15d   :  { %11 = sbr.rel (!%p9_p5) target bundleno = 2 (0x2), region = 70 }

</bundles_post_ra>
